<compile_context>
chip_gen: v7x
topology: tpu7x:2x2x1
jax: 0.10.0
libtpu: 0.0.40
codegen_flags: <defaults>
</compile_context>

<pallas_src>
import functools

import jax
import jax.numpy as jnp
from jax.experimental import pallas as pl
from jax.experimental.pallas import tpu as pltpu


def _round_up(x, m):
    return ((x + m - 1) // m) * m


def _conv2d_kernel(xm_ref, halo_ref, w_ref, b_ref, o_ref, *, kh, kw):
    """One output row-tile of the cross-correlation.

    xm_ref:   (TM, Wp_in)    f32 VMEM  -- main input rows of this tile
    halo_ref: (1, HR, Wp_in) f32 VMEM  -- next (kh-1) input rows (halo)
    w_ref:    (kh*kw,)       f32 SMEM  -- flattened kernel weights
    b_ref:    (1,)           f32 SMEM  -- scalar bias
    o_ref:    (TM, Wp_out)   f32 VMEM  -- lane-dense output tile
    """
    tm, wp_out = o_ref.shape
    # Stitch the (TM + kh - 1)-row input strip for this tile once; every tap
    # below is a static row/lane-offset slice of this single strip.
    x_strip = jnp.concatenate([xm_ref[...], halo_ref[0]], axis=0)
    # Fold the bias and the first tap into the accumulator init: no zero
    # materialize and no extra "+ bias" pass over the tile.
    acc = w_ref[0] * x_strip[0:tm, 0:wp_out] + b_ref[0]
    for i in range(kh):            # static unroll: broadcasts stay trace-level
        for j in range(kw):
            if i == 0 and j == 0:
                continue
            acc = acc + w_ref[i * kw + j] * x_strip[i:i + tm, j:j + wp_out]
    o_ref[...] = acc


def conv2d_pallas(x, weight, bias=None, *, tm_max=256):
    """corr2d(x, weight) + bias, matching the PyTorch Conv2D module's forward."""
    H, W = x.shape
    kh, kw = weight.shape
    Ho, Wo = H - kh + 1, W - kw + 1

    # Lane-dense output width; input gets an extra lane-tile of zero padding so
    # the kw column taps are in-bounds static slices.
    wp_out = _round_up(max(Wo, 1), 128)
    lane_pad = _round_up(kw - 1, 128) if kw > 1 else 0
    wp_in = wp_out + lane_pad

    # Row-tile size: multiple of 8, capped at tm_max and by a VMEM budget so
    # double-buffered in/out tiles + in-kernel strip/acc temporaries <= ~24 MiB.
    per_row_bytes = 4 * (3 * wp_in + 3 * wp_out)
    budget_rows = max(8, ((24 * 1024 * 1024) // per_row_bytes) // 8 * 8)
    tm = min(tm_max, budget_rows, _round_up(max(Ho, 1), 8))
    ho_pad = _round_up(Ho, tm)
    num_tiles = ho_pad // tm
    hr = max(kh - 1, 1)

    # Zero-padded input; padding only feeds output rows/cols that get sliced off.
    hp_in = ho_pad + kh - 1
    x_pad = jnp.zeros((hp_in, wp_in), jnp.float32)
    x_pad = x_pad.at[:H, :W].set(x.astype(jnp.float32))
    x_main = x_pad[:ho_pad]
    # Halo rows for tile t: input rows (t+1)*tm .. (t+1)*tm + kh - 2.
    row_ids = (jnp.arange(num_tiles)[:, None] + 1) * tm + jnp.arange(hr)[None, :]
    row_ids = jnp.minimum(row_ids, hp_in - 1)
    halo = x_pad[row_ids]                      # (num_tiles, hr, wp_in)

    w_flat = weight.astype(jnp.float32).reshape(-1)
    if bias is None:                           # use_bias=False path
        b = jnp.zeros((1,), jnp.float32)
    else:
        b = bias.astype(jnp.float32).reshape(1)

    kernel = functools.partial(_conv2d_kernel, kh=kh, kw=kw)
    out_padded = pl.pallas_call(
        kernel,
        grid=(num_tiles,),
        in_specs=[
            pl.BlockSpec((tm, wp_in), lambda t: (t, 0)),        # main rows
            pl.BlockSpec((1, hr, wp_in), lambda t: (t, 0, 0)),  # halo rows
            pl.BlockSpec(memory_space=pltpu.MemorySpace.SMEM),  # weights (1-D)
            pl.BlockSpec(memory_space=pltpu.MemorySpace.SMEM),  # bias
        ],
        out_specs=pl.BlockSpec((tm, wp_out), lambda t: (t, 0)),
        out_shape=jax.ShapeDtypeStruct((ho_pad, wp_out), jnp.float32),
        compiler_params=pltpu.CompilerParams(
            dimension_semantics=("parallel",),   # independent row tiles (v7x: 2 TCs)
        ),
    )(x_main, halo, w_flat, b)
    return out_padded[:Ho, :Wo]


def corr2d_ref(x, k):
    """Pure-JAX reference identical to the PyTorch corr2d loop."""
    kh, kw = k.shape
    Ho, Wo = x.shape[0] - kh + 1, x.shape[1] - kw + 1
    y = jnp.zeros((Ho, Wo), jnp.float32)
    for i in range(kh):
        for j in range(kw):
            y = y + k[i, j] * x[i:i + Ho, j:j + Wo]
    return y


if __name__ == "__main__":
    conv = jax.jit(conv2d_pallas)
    zero_b = jnp.zeros((1,), jnp.float32)

    # Check 1: the exact example from the module spec.
    X = jnp.array([[0., 1., 2.], [3., 4., 5.], [6., 7., 8.]], jnp.float32)
    K = jnp.array([[0., 1.], [2., 3.]], jnp.float32)
    y0 = jax.block_until_ready(conv(X, K, zero_b))
    assert y0.shape == (2, 2), y0.shape
    assert jnp.allclose(y0, jnp.array([[19., 25.], [37., 43.]]), atol=1e-5), "spec example mismatch"

    # Check 2: module-style init (weight=randn(kernel_size), bias=zeros(1)), 16x16 image.
    key = jax.random.PRNGKey(0)
    k_x, k_w, k_x2, k_w2, k_b2 = jax.random.split(key, 5)
    weight = jax.random.normal(k_w, (2, 2), dtype=jnp.float32)
    bias = jnp.zeros((1,), dtype=jnp.float32)
    x = jax.random.normal(k_x, (16, 16), dtype=jnp.float32)
    y = jax.block_until_ready(conv(x, weight, bias))
    y_ref = corr2d_ref(x, weight) + bias[0]
    assert y.shape == (15, 15), y.shape
    assert jnp.allclose(y, y_ref, atol=1e-5, rtol=1e-5), "mismatch vs reference (2x2)"

    # Check 3: non-aligned odd shapes, 3x3 kernel, nonzero bias.
    x2 = jax.random.normal(k_x2, (33, 47), dtype=jnp.float32)
    w2 = jax.random.normal(k_w2, (3, 3), dtype=jnp.float32)
    b2 = jax.random.normal(k_b2, (1,), dtype=jnp.float32)
    y2 = jax.block_until_ready(conv(x2, w2, b2))
    y2_ref = corr2d_ref(x2, w2) + b2[0]
    assert y2.shape == (31, 45), y2.shape
    assert jnp.allclose(y2, y2_ref, atol=1e-4, rtol=1e-4), "mismatch vs reference (3x3)"

    print("KERNEL_OK")
</pallas_src>

<mosaic_0001>
module attributes {stable_mosaic.version = 11 : i64} {
  func.func @_conv2d_kernel(%arg0: i32, %arg1: memref<8x256xf32, #tpu.memory_space<vmem>>, %arg2: memref<1x1x256xf32, #tpu.memory_space<vmem>>, %arg3: memref<4xf32, #tpu.memory_space<smem>>, %arg4: memref<1xf32, #tpu.memory_space<smem>>, %arg5: memref<8x128xf32, #tpu.memory_space<vmem>>) attributes {dimension_semantics = [#tpu.dimension_semantics<parallel>], iteration_bounds = array<i64: 1>, scalar_prefetch = 0 : i64, scratch_operands = 0 : i64, tpu.core_type = #tpu.core_type<tc>, window_params = [{transform_indices = @transform_0, window_bounds = array<i64: 8, 256>}, {transform_indices = @transform_1, window_bounds = array<i64: 1, 1, 256>}, {transform_indices = @transform_2, window_bounds = array<i64: 4>}, {transform_indices = @transform_3, window_bounds = array<i64: 1>}, {transform_indices = @transform_4, window_bounds = array<i64: 8, 128>}]} {
    %c0 = arith.constant 0 : index
    %c0_0 = arith.constant 0 : index
    %0 = vector.load %arg1[%c0, %c0_0] : memref<8x256xf32, #tpu.memory_space<vmem>>, vector<8x256xf32>
    %c0_1 = arith.constant 0 : index
    %c0_2 = arith.constant 0 : index
    %c0_3 = arith.constant 0 : index
    %1 = vector.load %arg2[%c0_1, %c0_2, %c0_3] : memref<1x1x256xf32, #tpu.memory_space<vmem>>, vector<1x1x256xf32>
    %2 = vector.shape_cast %1 : vector<1x1x256xf32> to vector<1x256xf32>
    %3 = tpu.concatenate %0, %2 in 0 : vector<8x256xf32>, vector<1x256xf32> -> vector<9x256xf32>
    %c0_4 = arith.constant 0 : index
    %4 = memref.load %arg3[%c0_4] : memref<4xf32, #tpu.memory_space<smem>>
    %5 = vector.extract_strided_slice %3 {offsets = [0, 0], sizes = [8, 128], strides = [1, 1]} : vector<9x256xf32> to vector<8x128xf32>
    %6 = vector.broadcast %4 : f32 to vector<8x128xf32>
    %7 = arith.mulf %6, %5 : vector<8x128xf32>
    %c0_5 = arith.constant 0 : index
    %8 = memref.load %arg4[%c0_5] : memref<1xf32, #tpu.memory_space<smem>>
    %9 = vector.broadcast %8 : f32 to vector<8x128xf32>
    %10 = arith.addf %7, %9 : vector<8x128xf32>
    %c1 = arith.constant 1 : index
    %11 = memref.load %arg3[%c1] : memref<4xf32, #tpu.memory_space<smem>>
    %12 = vector.extract_strided_slice %3 {offsets = [0, 1], sizes = [8, 128], strides = [1, 1]} : vector<9x256xf32> to vector<8x128xf32>
    %13 = vector.broadcast %11 : f32 to vector<8x128xf32>
    %14 = arith.mulf %13, %12 : vector<8x128xf32>
    %15 = arith.addf %10, %14 : vector<8x128xf32>
    %c2 = arith.constant 2 : index
    %16 = memref.load %arg3[%c2] : memref<4xf32, #tpu.memory_space<smem>>
    %17 = vector.extract_strided_slice %3 {offsets = [1, 0], sizes = [8, 128], strides = [1, 1]} : vector<9x256xf32> to vector<8x128xf32>
    %18 = vector.broadcast %16 : f32 to vector<8x128xf32>
    %19 = arith.mulf %18, %17 : vector<8x128xf32>
    %20 = arith.addf %15, %19 : vector<8x128xf32>
    %c3 = arith.constant 3 : index
    %21 = memref.load %arg3[%c3] : memref<4xf32, #tpu.memory_space<smem>>
    %22 = vector.extract_strided_slice %3 {offsets = [1, 1], sizes = [8, 128], strides = [1, 1]} : vector<9x256xf32> to vector<8x128xf32>
    %23 = vector.broadcast %21 : f32 to vector<8x128xf32>
    %24 = arith.mulf %23, %22 : vector<8x128xf32>
    %25 = arith.addf %20, %24 : vector<8x128xf32>
    %c0_6 = arith.constant 0 : index
    %c0_7 = arith.constant 0 : index
    %26 = vector.load %arg5[%c0_6, %c0_7] : memref<8x128xf32, #tpu.memory_space<vmem>>, vector<8x128xf32>
    tpu.vector_store %arg5[%c0_6, %c0_7], %25 {strides = array<i32>} : memref<8x128xf32, #tpu.memory_space<vmem>>, vector<8x128xf32>,
    return
  }
  func.func @transform_0(%arg0: i32) -> (i32, i32) {
    %c0_i32 = arith.constant 0 : i32
    %c0_i32_0 = arith.constant 0 : i32
    return %arg0, %c0_i32 : i32, i32
  }
  func.func @transform_1(%arg0: i32) -> (i32, i32, i32) {
    %c0_i32 = arith.constant 0 : i32
    %c0_i32_0 = arith.constant 0 : i32
    %c0_i32_1 = arith.constant 0 : i32
    return %arg0, %c0_i32, %c0_i32_0 : i32, i32, i32
  }
  func.func @transform_2(%arg0: i32) -> i32 {
    %c0_i32 = arith.constant 0 : i32
    %c0_i32_0 = arith.constant 0 : i32
    return %c0_i32 : i32
  }
  func.func @transform_3(%arg0: i32) -> i32 {
    %c0_i32 = arith.constant 0 : i32
    %c0_i32_0 = arith.constant 0 : i32
    return %c0_i32 : i32
  }
  func.func @transform_4(%arg0: i32) -> (i32, i32) {
    %c0_i32 = arith.constant 0 : i32
    %c0_i32_0 = arith.constant 0 : i32
    return %arg0, %c0_i32 : i32, i32
  }
}

</mosaic_0001>

<bundles_post_ra>
// kernel: conv2d_pallas.1
= control target key start
LH: loop header
LB: loop body
LE: loop exit
PB: predicated region body
PF: predicated region fallthrough
CT: control target
= control target key end

     0   :  { %10 = vsyncpa [#allocation4], 0  ;;  %s170_s0 = inlined_call_operand.vmem [shape: f32[8,256], index: 0, kind: input, shape index: {}]   ;;  %s171_s1 = inlined_call_operand.vmem [shape: f32[1,1,256], index: 1, kind: input, shape index: {}]   ;;  %s172_s2 = inlined_call_operand.vmem [shape: f32[4], index: 2, kind: input, shape index: {}]   ;;  %s173_s3 = inlined_call_operand.<no memory space> [shape: f32[1], index: 3, kind: input, shape index: {}]   ;;  %s174_s4 = inlined_call_operand.vmem [shape: f32[8,128], index: 4, kind: output, shape index: {}]  }
   0x1   :  { %s21_s17 = sshll.u32 %s172_s2, 4  ;;  %s22_s17 = int_to_ptr.vmem [resolvable:$true] %s21_s17 }
   0x2   :  { %s111_s18 = scalar_lea.vmem %s22_s17, 16  ;;  %p116_p1 = scmp.lt.s32.totalorder %s22_s17, %s22_s17 }
   0x3   :  { %p112_p0 = scmp.ne.s32.totalorder %s22_s17, %s111_s18  ;;  %p117_p2 = scmp.lt.s32.totalorder %s111_s18, %s111_s18 }
   0x5   :  { %p118_p3 = por %p117_p2, %p116_p1 }
   0x7   :  { %p119_p4 = pnand %p118_p3, %p112_p0 }
   0x9   :  { %122 = shalt.err (!%p119_p4)
}
   0xa   :  { %s125_s19 = smov [#allocation3]  }
   0xb   :  { %24 = dma.vmem_to_smem %s22_s17, 16, %s125_s19, [#allocation4]  }
   0xc   :  { %123 = dma.done.wait [#allocation4], 16  }
   0xd   :  { %124 = vsyncadd [#allocation4], 4294967280 }
   0xe   :  { %30 = sfence }
   0xf   :  { %s106_s20 = sld [smem:[#allocation3 + $0x1]]  ;;  %v35_v0 = vlaneseq  ;;  %s107_s21 = sld [smem:[#allocation3 + $0x2]]  ;;  %v33_v2 = vld [vmem:[%s171_s1] sm:$0x3]  ;;  %v32_v6 = vld [vmem:[%s170_s0 + $0x8] sm:$0xff]  ;;  %vm71_vm0 = vcmask 1046528   ;;  %v49_v31 = vstv %s173_s3 }
  0x10   :  { %s108_s22 = sld [smem:[#allocation3 + $0x3]]  ;;  %v31_v3 = vld [vmem:[%s170_s0] sm:$0xff]  ;;  %s126_s1 = smov 127   ;;  %vm61_vm1 = vcmask 1039360  }
  0x11   :  { %v36_v1 = vshrl.u32 %v35_v0, 7  ;;  %s45_s0 = sld [smem:[#allocation3]] }
  0x13   :  { %v37_v4 = vsub.s32 0, %v36_v1  ;;  %v41_v5 = vsub.s32 1, %v36_v1 }
  0x15   :  { %v52_v7 = vstv %s106_s20  ;;  %v38_v8 = vrot.slane %v33_v2, %v37_v4  ;;  %v42_v9 = vrot.slane %v33_v2, %v41_v5  ;;  %v66_v11 = vstv %s107_s21 }
  0x16   :  { %v53_v10 = vmul.f32 %v52_v7, %v31_v3  ;;  %v78_v12 = vstv %s108_s22  ;;  %v67_v13 = vmul.f32 %v66_v11, %v31_v3  ;;  %v54_v17 = vmul.f32 %v52_v7, %v32_v6 }
  0x17   :  { %v80_v14 = vmul.f32 %v78_v12, %v32_v6  ;;  %v68_v15 = vmul.f32 %v66_v11, %v38_v8  ;;  %v79_v16 = vmul.f32 %v78_v12, %v31_v3  ;;  %v81_v18 = vmul.f32 %v78_v12, %v38_v8 }
  0x18   :  { %57 = vrot.lane.b32.xlu0 %v53_v10, %s126_s1  ;;  %v82_v19 = vmul.f32 %v78_v12, %v42_v9  ;;  %v72_v22 = vrot.slane %v67_v13, 1  ;;  %v46_v29 = vstv %s45_s0 }
  0x19   :  { %v73_v20 = vrot.slane %v68_v15, 1  ;;  %v87_v21 = vrot.slane %v79_v16, 1  ;;  %v90_v23 = vrot.slane %v80_v14, 1  ;;  %v88_v24 = vrot.slane %v81_v18, 1 }
  0x1a   :  { %v91_v25 = vrot.slane %v82_v19, 1  ;;  %v47_v30 = vmul.f32 %v46_v29, %v31_v3 }
  0x1b   :  { %v74_v26 = vsel %vm71_vm0, %v72_v22, %v73_v20  ;;  %v89_v27 = vsel %vm71_vm0, %v87_v21, %v88_v24 }
  0x1c   :  { %59 = vrot.lane.b32.xlu0 %v54_v17, %s126_s1  ;;  %93 = vrot.lane.b32.xlu1 %v89_v27, %s126_s1  ;;  %v92_v28 = vsel %vm71_vm0, %v90_v23, %v91_v25  ;;  %v50_v33 = vadd.f32 %v49_v31, %v47_v30 }
  0x20   :  { %95 = vrot.lane.b32.xlu1 %v92_v28, %s126_s1 }
  0x8a   :  { %v58_v32 = vpop.permute.xlu0 %57 }
  0x8e   :  { %v60_v34 = vpop.permute.xlu0 %59  ;;  %v94_v35 = vpop.permute.xlu1 %93 }
  0x8f   :  { %v62_v36 = vsel %vm61_vm1, %v58_v32, %v60_v34 }
  0x90   :  { %v64_v37 = vadd.f32 %v62_v36, %v50_v33 }
  0x92   :  { %v76_v38 = vadd.f32 %v74_v26, %v64_v37  ;;  %v96_v39 = vpop.permute.xlu1 %95 }
  0x93   :  { %v97_v40 = vsel %vm61_vm1, %v94_v35, %v96_v39 }
  0x94   :  { %v99_v41 = vadd.f32 %v97_v40, %v76_v38 }
  0x96   :  { %100 = vst [vmem:[%s174_s4] sm:$0xff] %v99_v41 }
  0x97   :  { %105 = vsyncpa [#allocation4], 1 }

</bundles_post_ra>
